<compile_context>
chip_gen: v6e
topology: v6e:2x2x1
jax: 0.10.0
libtpu: 0.0.40
codegen_flags: <defaults>
</compile_context>

<pallas_src>
import jax
import jax.numpy as jnp
from jax.experimental import pallas as pl
from jax.experimental.pallas import tpu as pltpu

LANE = 128      # TPU vreg lane count (last dim)
SUBLANE = 8     # TPU vreg sublane count (second-to-last dim)


def _round_up(x, m):
    return ((x + m - 1) // m) * m


def autoencoder_kernel(x_ref, w1_ref, b1_ref, w2_ref, b2_ref, o_ref):
    # Encoder: Linear(D_in -> D_enc) + ReLU   (+ Dropout(0.2) in eval = identity)
    x = x_ref[...]                                          # [TB, D_in]
    h = jnp.dot(x, w1_ref[...],
                preferred_element_type=jnp.float32)         # [TB, D_enc] on the MXU
    h = jnp.maximum(h + b1_ref[...], 0.0)                   # bias broadcast + ReLU (VPU)

    # Decoder: Linear(D_enc -> D_in) + Sigmoid
    y = jnp.dot(h, w2_ref[...],
                preferred_element_type=jnp.float32)         # [TB, D_in] on the MXU
    y = y + b2_ref[...]

    # Exact sigmoid: exp on the EUP + exact divide.  EUP/VALU have plenty of slack here.
    o_ref[...] = 1.0 / (1.0 + jnp.exp(-y))


def prepare_autoencoder_params(w1, b1, w2, b2):
    """One-time parameter prep (call at model setup, NOT per forward).

    w1: [D_enc, D_in] (PyTorch layout), b1: [D_enc], w2: [D_in, D_enc], b2: [D_in].
    Returns (w1_t [D_in,D_enc], b1_row [1,D_enc], w2_t [D_enc,D_in], b2_row [1,D_in]) in f32.
    """
    f32 = jnp.float32
    w1_t = jnp.asarray(w1, f32).T
    w2_t = jnp.asarray(w2, f32).T
    b1_row = jnp.asarray(b1, f32).reshape(1, -1)
    b2_row = jnp.asarray(b2, f32).reshape(1, -1)
    return w1_t, b1_row, w2_t, b2_row


def autoencoder_forward(x, w1_t, b1_row, w2_t, b2_row, *, batch_tile=1024):
    """x: [B, D_in] f32; params from prepare_autoencoder_params. Returns [B, D_in] f32."""
    B, D_in = x.shape
    d_in_w, D_enc = w1_t.shape
    assert d_in_w == D_in and w2_t.shape == (D_enc, D_in)
    assert b1_row.shape == (1, D_enc) and b2_row.shape == (1, D_in)

    f32 = jnp.float32
    x = x.astype(f32)

    # ---- batch tiling ------------------------------------------------------
    b_sub = _round_up(B, SUBLANE)
    tb = min(batch_tile, b_sub)
    # v7x: "parallel" grid steps are sharded across the 2 TensorCores; make sure there are
    # >= 2 steps when the batch allows it (harmless extra ~0.35us step on v5e/v6e).
    if tb == b_sub and b_sub >= 2 * SUBLANE:
        tb = _round_up(pl.cdiv(b_sub, 2), SUBLANE)
    # Limit batch-padding waste to <= ~12.5% for awkward batch sizes.
    while tb > SUBLANE and (_round_up(b_sub, tb) - b_sub) * 8 > b_sub:
        tb = _round_up(tb // 2, SUBLANE)
    b_pad = _round_up(b_sub, tb)
    n_b = b_pad // tb

    x_in = x if b_pad == B else jnp.zeros((b_pad, D_in), f32).at[:B].set(x)

    # ---- advisory cost for XLA scheduling around the custom call -----------
    flops = 2 * b_pad * (D_in * D_enc + D_enc * D_in)
    bytes_accessed = 4 * (2 * b_pad * D_in            # x in, out
                          + 2 * D_in * D_enc          # w1, w2
                          + D_enc + D_in)             # b1, b2
    cost = pl.CostEstimate(flops=flops,
                           transcendentals=b_pad * D_in,   # one exp per output element
                           bytes_accessed=bytes_accessed)

    # ---- VMEM budget (double-buffered tiles + resident weights) + headroom --
    vmem_needed = 4 * (2 * 2 * tb * D_in              # x + out tiles, double-buffered
                       + 2 * 2 * D_in * D_enc         # w1 + w2
                       + 2 * (D_enc + D_in))          # biases
    vmem_limit = int(min(max(2 * vmem_needed, 32 * 1024 * 1024), 100 * 1024 * 1024))

    vmem = pltpu.MemorySpace.VMEM
    out = pl.pallas_call(
        autoencoder_kernel,
        out_shape=jax.ShapeDtypeStruct((b_pad, D_in), f32),
        grid=(n_b,),
        in_specs=[
            # x: tiled over the batch grid axis, native feature width.
            pl.BlockSpec((tb, D_in), lambda i: (i, 0), memory_space=vmem),
            # Weights/biases: constant index_map -> VMEM-resident across all grid steps.
            pl.BlockSpec((D_in, D_enc), lambda i: (0, 0), memory_space=vmem),
            pl.BlockSpec((1, D_enc), lambda i: (0, 0), memory_space=vmem),
            pl.BlockSpec((D_enc, D_in), lambda i: (0, 0), memory_space=vmem),
            pl.BlockSpec((1, D_in), lambda i: (0, 0), memory_space=vmem),
        ],
        out_specs=pl.BlockSpec((tb, D_in), lambda i: (i, 0), memory_space=vmem),
        compiler_params=pltpu.CompilerParams(
            dimension_semantics=("parallel",),   # batch tiles are independent
            vmem_limit_bytes=vmem_limit,
        ),
        cost_estimate=cost,
    )(x_in, w1_t, b1_row, w2_t, b2_row)

    return out if b_pad == B else out[:B]


def _pytorch_linear_init(key, fan_in, fan_out):
    """Deterministic stand-in for nn.Linear default init (uniform +/- 1/sqrt(fan_in))."""
    kw, kb = jax.random.split(key)
    bound = 1.0 / (fan_in ** 0.5)
    w = jax.random.uniform(kw, (fan_out, fan_in), jnp.float32, -bound, bound)
    b = jax.random.uniform(kb, (fan_out,), jnp.float32, -bound, bound)
    return w, b


if __name__ == "__main__":
    input_dim = 32      # stands in for scaler.mean_.shape[0]
    encoding_dim = 10
    batch = 8

    key = jax.random.PRNGKey(0)
    k_x, k_enc, k_dec = jax.random.split(key, 3)

    x = jax.random.normal(k_x, (batch, input_dim), jnp.float32)

    # encoder Linear(input_dim, encoding_dim); decoder Linear(encoding_dim, input_dim)
    w1, b1 = _pytorch_linear_init(k_enc, input_dim, encoding_dim)   # [enc, in], [enc]
    w2, b2 = _pytorch_linear_init(k_dec, encoding_dim, input_dim)   # [in, enc], [in]

    # One-time parameter preparation (transpose / bias row / f32) — not part of forward.
    params = prepare_autoencoder_params(w1, b1, w2, b2)

    out = autoencoder_forward(x, *params)
    out = jax.block_until_ready(out)

    # Pure-JAX reference (same eval-mode semantics); exact sigmoid so tight tolerance.
    h_ref = jnp.maximum(x @ w1.T + b1, 0.0)
    y_ref = jax.nn.sigmoid(h_ref @ w2.T + b2)
    assert out.shape == (batch, input_dim)
    assert jnp.allclose(out, y_ref, atol=1e-5, rtol=1e-5), float(jnp.max(jnp.abs(out - y_ref)))

    print("KERNEL_OK")
</pallas_src>

<mosaic_0001>
module attributes {stable_mosaic.version = 11 : i64} {
  func.func @autoencoder_kernel(%arg0: i32, %arg1: memref<8x32xf32, #tpu.memory_space<vmem>>, %arg2: memref<32x10xf32, #tpu.memory_space<vmem>>, %arg3: memref<1x10xf32, #tpu.memory_space<vmem>>, %arg4: memref<10x32xf32, #tpu.memory_space<vmem>>, %arg5: memref<1x32xf32, #tpu.memory_space<vmem>>, %arg6: memref<8x32xf32, #tpu.memory_space<vmem>>) attributes {dimension_semantics = [#tpu.dimension_semantics<parallel>], iteration_bounds = array<i64: 1>, scalar_prefetch = 0 : i64, scratch_operands = 0 : i64, tpu.core_type = #tpu.core_type<tc>, window_params = [{transform_indices = @transform_0, window_bounds = array<i64: 8, 32>}, {pipeline_mode = #tpu.pipeline_mode<synchronous>, transform_indices = @transform_1, window_bounds = array<i64: 32, 10>}, {pipeline_mode = #tpu.pipeline_mode<synchronous>, transform_indices = @transform_2, window_bounds = array<i64: 1, 10>}, {pipeline_mode = #tpu.pipeline_mode<synchronous>, transform_indices = @transform_3, window_bounds = array<i64: 10, 32>}, {pipeline_mode = #tpu.pipeline_mode<synchronous>, transform_indices = @transform_4, window_bounds = array<i64: 1, 32>}, {transform_indices = @transform_5, window_bounds = array<i64: 8, 32>}]} {
    %c0 = arith.constant 0 : index
    %c0_0 = arith.constant 0 : index
    %0 = vector.load %arg1[%c0, %c0_0] : memref<8x32xf32, #tpu.memory_space<vmem>>, vector<8x32xf32>
    %c0_1 = arith.constant 0 : index
    %c0_2 = arith.constant 0 : index
    %1 = vector.load %arg2[%c0_1, %c0_2] : memref<32x10xf32, #tpu.memory_space<vmem>>, vector<32x10xf32>
    %cst = arith.constant dense<0.000000e+00> : vector<8x10xf32>
    %2 = tpu.matmul %0, %1, %cst {dimension_numbers = #tpu.dot_dimension_numbers<[1], [0], [0], [1], [0, 0, 1, 1], [], []>} : vector<8x32xf32>, vector<32x10xf32>, vector<8x10xf32> -> vector<8x10xf32>
    %c0_3 = arith.constant 0 : index
    %c0_4 = arith.constant 0 : index
    %3 = vector.load %arg3[%c0_3, %c0_4] : memref<1x10xf32, #tpu.memory_space<vmem>>, vector<1x10xf32>
    %4 = vector.broadcast %3 : vector<1x10xf32> to vector<8x10xf32>
    %5 = arith.addf %2, %4 : vector<8x10xf32>
    %cst_5 = arith.constant 0.000000e+00 : f32
    %6 = vector.broadcast %cst_5 : f32 to vector<8x10xf32>
    %7 = arith.maximumf %5, %6 : vector<8x10xf32>
    %c0_6 = arith.constant 0 : index
    %c0_7 = arith.constant 0 : index
    %8 = vector.load %arg4[%c0_6, %c0_7] : memref<10x32xf32, #tpu.memory_space<vmem>>, vector<10x32xf32>
    %cst_8 = arith.constant dense<0.000000e+00> : vector<8x32xf32>
    %9 = tpu.matmul %7, %8, %cst_8 {dimension_numbers = #tpu.dot_dimension_numbers<[1], [0], [0], [1], [0, 0, 1, 1], [], []>} : vector<8x10xf32>, vector<10x32xf32>, vector<8x32xf32> -> vector<8x32xf32>
    %c0_9 = arith.constant 0 : index
    %c0_10 = arith.constant 0 : index
    %10 = vector.load %arg5[%c0_9, %c0_10] : memref<1x32xf32, #tpu.memory_space<vmem>>, vector<1x32xf32>
    %11 = vector.broadcast %10 : vector<1x32xf32> to vector<8x32xf32>
    %12 = arith.addf %9, %11 : vector<8x32xf32>
    %cst_11 = arith.constant 0.000000e+00 : f32
    %13 = vector.broadcast %cst_11 : f32 to vector<8x32xf32>
    %14 = arith.subf %13, %12 : vector<8x32xf32>
    %15 = math.exp %14 : vector<8x32xf32>
    %cst_12 = arith.constant 1.000000e+00 : f32
    %16 = vector.broadcast %cst_12 : f32 to vector<8x32xf32>
    %17 = arith.addf %16, %15 : vector<8x32xf32>
    %cst_13 = arith.constant 1.000000e+00 : f32
    %18 = vector.broadcast %cst_13 : f32 to vector<8x32xf32>
    %19 = arith.divf %18, %17 : vector<8x32xf32>
    %c0_14 = arith.constant 0 : index
    %c0_15 = arith.constant 0 : index
    %20 = vector.load %arg6[%c0_14, %c0_15] : memref<8x32xf32, #tpu.memory_space<vmem>>, vector<8x32xf32>
    tpu.vector_store %arg6[%c0_14, %c0_15], %19 {strides = array<i32>} : memref<8x32xf32, #tpu.memory_space<vmem>>, vector<8x32xf32>,
    return
  }
  func.func @transform_0(%arg0: i32) -> (i32, i32) {
    %c0_i32 = arith.constant 0 : i32
    %c0_i32_0 = arith.constant 0 : i32
    return %arg0, %c0_i32 : i32, i32
  }
  func.func @transform_1(%arg0: i32) -> (i32, i32) {
    %c0_i32 = arith.constant 0 : i32
    %c0_i32_0 = arith.constant 0 : i32
    %c0_i32_1 = arith.constant 0 : i32
    return %c0_i32, %c0_i32_0 : i32, i32
  }
  func.func @transform_2(%arg0: i32) -> (i32, i32) {
    %c0_i32 = arith.constant 0 : i32
    %c0_i32_0 = arith.constant 0 : i32
    %c0_i32_1 = arith.constant 0 : i32
    return %c0_i32, %c0_i32_0 : i32, i32
  }
  func.func @transform_3(%arg0: i32) -> (i32, i32) {
    %c0_i32 = arith.constant 0 : i32
    %c0_i32_0 = arith.constant 0 : i32
    %c0_i32_1 = arith.constant 0 : i32
    return %c0_i32, %c0_i32_0 : i32, i32
  }
  func.func @transform_4(%arg0: i32) -> (i32, i32) {
    %c0_i32 = arith.constant 0 : i32
    %c0_i32_0 = arith.constant 0 : i32
    %c0_i32_1 = arith.constant 0 : i32
    return %c0_i32, %c0_i32_0 : i32, i32
  }
  func.func @transform_5(%arg0: i32) -> (i32, i32) {
    %c0_i32 = arith.constant 0 : i32
    %c0_i32_0 = arith.constant 0 : i32
    return %arg0, %c0_i32 : i32, i32
  }
}

</mosaic_0001>

<bundles_post_ra>
// kernel: tpu_custom_call.1
= control target key start
LH: loop header
LB: loop body
LE: loop exit
PB: predicated region body
PF: predicated region fallthrough
CT: control target
= control target key end

     0   :  { %v276_v1 = vmov 0.0   ;;  %vm277_vm0 = vmmov 0   ;;  %s341_s0 = inlined_call_operand.vmem [shape: f32[8,32], index: 0, kind: input, shape index: {}]   ;;  %s342_s1 = inlined_call_operand.vmem [shape: f32[32,10], index: 1, kind: input, shape index: {}]   ;;  %s343_s2 = inlined_call_operand.vmem [shape: f32[1,10], index: 2, kind: input, shape index: {}]   ;;  %s344_s3 = inlined_call_operand.vmem [shape: f32[10,32], index: 3, kind: input, shape index: {}]   ;;  %s345_s4 = inlined_call_operand.vmem [shape: f32[1,32], index: 4, kind: input, shape index: {}]   ;;  %s346_s5 = inlined_call_operand.hbm [shape: f32[8,32], index: 5, kind: output, shape index: {}]  }
   0x1   :  { %v25_v0 = vld [vmem:[%s342_s1 + $0x18] sm:$0xff]  ;;  %229 = vmatprep.subr.mxu0 %v276_v1  ;;  %v24_v2 = vld [vmem:[%s342_s1 + $0x10] sm:$0xff]  ;;  %237 = vmatprep.mubr.msk.f32.mxu0 %vm277_vm0, %v276_v1 }
   0x2   :  { %230 = vmatpush3.msra.mxu0 %v25_v0  ;;  %240 = vmatprep.subr.mxu1 %v276_v1 }
   0x3   :  { %10 = vsyncpa [#allocation3], 0  ;;  %231 = vmatprep.subr.mxu0 %v276_v1  ;;  %v23_v3 = vld [vmem:[%s342_s1 + $0x8] sm:$0xff]  ;;  %244 = vmatprep.mubr.msk.f32.mxu1 %vm277_vm0, %v276_v1  ;;  %v22_v4 = vld [vmem:[%s342_s1] sm:$0xff]  ;;  %vm33_vm1 = vcmask 261120   ;;  %vm121_vm2 = vcmask 1041408  }
   0x4   :  { %232 = vmatpush3.msra.mxu0 %v24_v2  ;;  %v21_v5 = vld [vmem:[%s341_s0] sm:$0xff]  ;;  %v109_v6 = vld [vmem:[%s344_s3 + $0x8] sm:$0x3]  ;;  %vm117_vm3 = vcmask 80896  }
   0x5   :  { %233 = vmatprep.subr.mxu0 %v276_v1  ;;  %241 = vmatpush3.msk.msra.mxu1 %vm121_vm2, %v109_v6  ;;  %v108_v7 = vld [vmem:[%s344_s3] sm:$0xff] }
   0x6   :  { %234 = vmatpush3.msra.mxu0 %v23_v3  ;;  %242 = vmatprep.subr.mxu1 %v276_v1  ;;  %v216_v8 = vld [vmem:[%s343_s2] ss:$0 sm:$0xff]  ;;  %s278_s2 = smov [#allocation2]  }
   0x7   :  { %235 = vmatprep.subr.mxu0 %v276_v1  ;;  %243 = vmatpush3.msra.mxu1 %v108_v7  ;;  %v218_v13 = vld [vmem:[%s345_s4] ss:$0 sm:$0xff]  ;;  %s208_s3 = sshll.u32 %s278_s2, 4  ;;  %s209_s3 = int_to_ptr.vmem [resolvable:$true] %s208_s3 }
   0x8   :  { %236 = vmatpush3.msra.mxu0 %v22_v4  ;;  %s254_s9 = scalar_lea.vmem %s209_s3, 128  ;;  %p259_p1 = scmp.lt.s32.totalorder %s209_s3, %s209_s3 }
   0x9   :  { %238 = vmatmul.mubr.msk.f32.vlgmr.msra.gmra.mxu0 %vm33_vm1, %v21_v5  ;;  %p255_p0 = scmp.ne.s32.totalorder %s209_s3, %s254_s9  ;;  %p260_p2 = scmp.lt.s32.totalorder %s254_s9, %s254_s9 }
   0xb   :  { %p261_p3 = por %p260_p2, %p259_p1 }
   0xd   :  { %p262_p4 = pnand %p261_p3, %p255_p0 }
  0xc9   :  { %v103_v9 = vpop.f32.mrf.mxu0 }
  0xca   :  { %v104_v10 = vadd.f32 %v216_v8, %v103_v9 }
  0xcb   :  { %v239_v11 = vpop.f32.mrf.mxu0 }
  0xcc   :  { %v107_v12 = vmax.f32 %v104_v10, 0.0 }
  0xce   :  { %245 = vmatmul.mubr.msk.f32.vlgmr.msra.gmra.mxu1 %vm117_vm3, %v107_v12 }
 0x18e   :  { %v191_v14 = vpop.f32.mrf.mxu1 }
 0x18f   :  { %v192_v15 = vadd.f32 %v218_v13, %v191_v14 }
 0x190   :  { %v246_v16 = vpop.f32.mrf.mxu1 }
 0x191   :  { %v195_v17 = vsub.f32 0.0, %v192_v15 }
 0x193   :  { %v196_v18 = vmul.f32 1.442695, %v195_v17 }
 0x195   :  { %250 = vpow2.f32 %v196_v18 }
 0x1a2   :  { %v251_v19 = vpop.eup %250 }
 0x1a3   :  { %v198_v20 = vadd.f32 1.0, %v251_v19 }
 0x1a5   :  { %252 = vrcp.f32 %v198_v20 }
 0x1b2   :  { %v253_v21 = vpop.eup %252 }
 0x1b3   :  { %201 = vst.msk [vmem:[#allocation2] sm:$0xff] %vm33_vm1, %v253_v21 }
 0x1b4   :  { %265 = shalt.err (!%p262_p4)
}
 0x1b5   :  { %211 = dma.vmem_to_hbm [thread:$0]  %s209_s3, 128, %s346_s5, [#allocation3]  }
 0x1b6   :  { %274 = dma.done.wait [#allocation3], 128  }
 0x1b7   :  { %275 = vsyncadd [#allocation3], 4294967168 }
 0x1b8   :  { %215 = vsyncpa [#allocation3], 1 }

</bundles_post_ra>
